<compile_context>
chip_gen: v7x
topology: tpu7x:2x2x1
jax: 0.10.0
libtpu: 0.0.40
codegen_flags: <defaults>
</compile_context>

<pallas_src>
import functools

import jax
import jax.numpy as jnp
from jax.experimental import pallas as pl
from jax.experimental.pallas import tpu as pltpu

_LANE = 128        # vreg lane width
_BATCH_ALIGN = 8   # f32 sublane tile height


def _round_up(n, m):
    return ((n + m - 1) // m) * m


def _pad2(a, rows, cols):
    pr, pc = rows - a.shape[0], cols - a.shape[1]
    if pr == 0 and pc == 0:
        return a                      # no-op: no extra HBM pass for aligned shapes
    return jnp.pad(a, ((0, pr), (0, pc)))


def _tpu_vmem_capacity_bytes():
    """Best-effort physical VMEM capacity per TensorCore (bytes)."""
    try:
        return int(pltpu.get_tpu_info().vmem_capacity_bytes)
    except Exception:
        pass
    try:
        kind = jax.devices()[0].device_kind.lower()
        if "v7" in kind:
            return 64 << 20
    except Exception:
        pass
    return 128 << 20


# --------------------------------------------------------------------------------------
# Kernel
# --------------------------------------------------------------------------------------
def dnn3_kernel(x_ref, w1_ref, w2_ref, w3_ref, aff_ref, o_ref, *, h1, h2, dout):
    # Packed per-feature shifts/bias (f32): row 0 = BN shift 1, row 1 = BN shift 2,
    # row 2 = output bias.  (BN scales were pre-folded into the weight columns.)
    t1 = aff_ref[0:1, :h1]
    t2 = aff_ref[1:2, :h2]
    b3 = aff_ref[2:3, :dout]

    # In-kernel bf16 cast of the streamed f32 x tile (hides under the MXU).
    x = x_ref[...].astype(jnp.bfloat16)

    # Hidden layer 1: bf16 matmul (f32 accumulate on the MXU) + shift + ReLU in f32.
    h = jnp.dot(x, w1_ref[...], preferred_element_type=jnp.float32)
    h = jnp.maximum(h + t1, 0.0).astype(jnp.bfloat16)
    # Hidden layer 2.
    h = jnp.dot(h, w2_ref[...], preferred_element_type=jnp.float32)
    h = jnp.maximum(h + t2, 0.0).astype(jnp.bfloat16)
    # Output linear (lane-dense store).
    o = jnp.dot(h, w3_ref[...], preferred_element_type=jnp.float32) + b3
    o_ref[...] = o.astype(o_ref.dtype)
    # TODO(synk): stochastic Dropout / training-mode BatchNorm are not reproduced; this
    # kernel implements the deterministic eval-mode forward pass only.


# --------------------------------------------------------------------------------------
# One-time parameter preparation (hoisted out of the per-call forward path)
# --------------------------------------------------------------------------------------
def prepare_params(params):
    """Fold BN scales into weights, lane-pad, cast to bf16, pack shifts/bias. Call ONCE."""
    (w1, s1, t1, w2, s2, t2, w3, b3) = params
    Din, H1 = w1.shape
    H2 = w2.shape[1]
    Dout = w3.shape[1]
    Din_p, H1_p, H2_p, Dout_p = (_round_up(d, _LANE) for d in (Din, H1, H2, Dout))
    L = max(H1_p, H2_p, Dout_p)

    w1p = _pad2(w1 * s1, Din_p, H1_p).astype(jnp.bfloat16)
    w2p = _pad2(w2 * s2, H1_p, H2_p).astype(jnp.bfloat16)
    w3p = _pad2(w3, H2_p, Dout_p).astype(jnp.bfloat16)

    aff = jnp.zeros((8, L), jnp.float32)
    aff = aff.at[0, :H1].set(t1.reshape(-1))
    aff = aff.at[1, :H2].set(t2.reshape(-1))
    aff = aff.at[2, :Dout].set(b3.reshape(-1))

    dims = dict(Din=Din, Dout=Dout, Din_p=Din_p, H1_p=H1_p, H2_p=H2_p, Dout_p=Dout_p, L=L)
    return dict(w1=w1p, w2=w2p, w3=w3p, aff=aff, dims=dims)


# --------------------------------------------------------------------------------------
# Forward
# --------------------------------------------------------------------------------------
def dnn3_forward(x, prepared, *, bm=None, out_dtype=jnp.float32):
    """Fused DNN3 eval-mode forward.  `prepared` comes from prepare_params()."""
    d = prepared["dims"]
    Din, Dout = d["Din"], d["Dout"]
    Din_p, H1_p, H2_p, Dout_p, L = d["Din_p"], d["H1_p"], d["H2_p"], d["Dout_p"], d["L"]
    B = x.shape[0]
    assert x.shape[1] == Din, "input feature dim mismatch"

    # Explicit scoped-VMEM limit: ~100 MiB on v5e/v6e (128 MiB physical),
    # ~52 MiB on v7x (64 MiB physical).
    vmem_cap = _tpu_vmem_capacity_bytes()
    vmem_limit = min(100 << 20, int(vmem_cap * 0.82))
    budget = int(vmem_limit * 0.9)

    out_itemsize = jnp.dtype(out_dtype).itemsize
    # Conservative resident footprint: assume 2 buffers per input spec.
    weight_bytes = 2 * 2 * (Din_p * H1_p + H1_p * H2_p + H2_p * Dout_p) + 2 * 4 * 8 * L

    # Batch tiling: 512-row tiles for large batches, otherwise a single tile.
    if bm is None:
        bm = 512 if B >= 512 else _round_up(B, _BATCH_ALIGN)
    bm = _round_up(min(bm, _round_up(B, _BATCH_ALIGN)), _BATCH_ALIGN)

    def tile_bytes(m):
        return 2 * m * Din_p * 4 + 2 * m * Dout_p * out_itemsize

    # Shrink the batch tile if the resident weights + streamed tiles would blow VMEM.
    while bm > _BATCH_ALIGN and weight_bytes + tile_bytes(bm) > budget:
        bm = _round_up(max(bm // 2, _BATCH_ALIGN), _BATCH_ALIGN)
    # TODO(synk): if the resident weights alone exceed the budget (very large layers on
    # v7x's 64 MiB VMEM), a K-tiled variant (extra "arbitrary" grid axis + f32 VMEM
    # accumulator) is required; not implemented here.

    B_p = _round_up(B, bm)
    grid = (B_p // bm,)

    # Only per-call wrapper op on x: a pad (no-op when B % bm == 0 and Din % 128 == 0).
    xp = _pad2(x, B_p, Din_p)

    kernel = functools.partial(dnn3_kernel, h1=H1_p, h2=H2_p, dout=Dout_p)

    flops = 2 * B_p * (Din_p * H1_p + H1_p * H2_p + H2_p * Dout_p)
    bytes_accessed = (B_p * Din_p * 4
                      + 2 * (Din_p * H1_p + H1_p * H2_p + H2_p * Dout_p)
                      + 4 * 8 * L
                      + B_p * Dout_p * out_itemsize)

    const = lambda i: (0, 0)
    out = pl.pallas_call(
        kernel,
        out_shape=jax.ShapeDtypeStruct((B_p, Dout_p), out_dtype),
        grid_spec=pl.GridSpec(
            grid=grid,
            in_specs=[
                pl.BlockSpec((bm, Din_p), lambda i: (i, 0)),   # x tile (streamed, f32)
                pl.BlockSpec((Din_p, H1_p), const),            # W1 * scale1 (resident)
                pl.BlockSpec((H1_p, H2_p), const),             # W2 * scale2 (resident)
                pl.BlockSpec((H2_p, Dout_p), const),           # W3 (resident)
                pl.BlockSpec((8, L), const),                   # packed shifts + bias
            ],
            out_specs=pl.BlockSpec((bm, Dout_p), lambda i: (i, 0)),
        ),
        compiler_params=pltpu.CompilerParams(
            dimension_semantics=("parallel",),
            vmem_limit_bytes=vmem_limit),
        cost_estimate=pl.CostEstimate(
            flops=flops, transcendentals=0, bytes_accessed=bytes_accessed),
    )(xp, prepared["w1"], prepared["w2"], prepared["w3"], prepared["aff"])

    return out[:B, :Dout]


# --------------------------------------------------------------------------------------
# Synthetic params + references
# --------------------------------------------------------------------------------------
def init_params(key, input_dim, output_dim, layer_sizes, eps=1e-5):
    """Deterministic synthetic parameters; BN folded into per-feature affine (eval mode)."""
    assert len(layer_sizes) == 2, "this script instantiates DNN3 with two hidden layers"
    dims = [input_dim] + list(layer_sizes)
    keys = jax.random.split(key, 16)
    k = iter(keys)

    folded = []
    for li in range(len(layer_sizes)):
        din, dout = dims[li], dims[li + 1]
        w = jax.random.normal(next(k), (din, dout), jnp.float32) * (1.0 / jnp.sqrt(din))
        b = jax.random.normal(next(k), (dout,), jnp.float32) * 0.1
        gamma = 1.0 + 0.1 * jax.random.normal(next(k), (dout,), jnp.float32)
        beta = 0.1 * jax.random.normal(next(k), (dout,), jnp.float32)
        running_mean = 0.1 * jax.random.normal(next(k), (dout,), jnp.float32)
        running_var = 1.0 + 0.1 * jax.random.uniform(next(k), (dout,), jnp.float32)
        # BatchNorm1d(eval): (y - mean) / sqrt(var + eps) * gamma + beta, y = x@W + b
        scale = gamma / jnp.sqrt(running_var + eps)
        shift = (b - running_mean) * scale + beta
        folded.append((w, scale.reshape(1, dout), shift.reshape(1, dout)))

    w3 = jax.random.normal(next(k), (layer_sizes[-1], output_dim), jnp.float32) \
        * (1.0 / jnp.sqrt(layer_sizes[-1]))
    b3 = jax.random.normal(next(k), (output_dim,), jnp.float32) * 0.1

    (w1, s1, t1), (w2, s2, t2) = folded
    return (w1, s1, t1, w2, s2, t2, w3, b3.reshape(1, output_dim))


def reference_forward(x, params):
    """Pure-JAX f32 reference of the eval-mode module."""
    (w1, s1, t1, w2, s2, t2, w3, b3) = params
    h = jnp.maximum(x @ w1 * s1 + t1, 0.0)
    h = jnp.maximum(h @ w2 * s2 + t2, 0.0)
    return h @ w3 + b3


def reference_forward_bf16(x, params):
    """Reference mirroring the kernel numerics: bf16 inputs/weights, f32 accumulation."""
    (w1, s1, t1, w2, s2, t2, w3, b3) = params
    rt = lambda a: a.astype(jnp.bfloat16).astype(jnp.float32)
    h = jnp.maximum(rt(x) @ rt(w1 * s1) + t1, 0.0)
    h = jnp.maximum(rt(h) @ rt(w2 * s2) + t2, 0.0)
    return rt(h) @ rt(w3) + b3


if __name__ == "__main__":
    key = jax.random.PRNGKey(0)
    kx, kp = jax.random.split(key)

    batch = 8
    input_dim = 16
    layer_sizes = [32, 32]
    output_dim = 8

    x = jax.random.normal(kx, (batch, input_dim), jnp.float32)
    params = init_params(kp, input_dim, output_dim, layer_sizes)

    prepared = prepare_params(params)   # one-time fold / pad / cast (not per forward call)

    out = jax.block_until_ready(dnn3_forward(x, prepared))
    assert out.shape == (batch, output_dim)

    ref_bf16 = reference_forward_bf16(x, params)   # same numerics as the kernel
    ref_f32 = reference_forward(x, params)         # original module semantics in f32
    assert jnp.allclose(out, ref_bf16, atol=1e-3, rtol=1e-3), "mismatch vs bf16 reference"
    assert jnp.allclose(out, ref_f32, atol=5e-2, rtol=5e-2), "mismatch vs f32 module reference"

    print("KERNEL_OK")
</pallas_src>

<mosaic_0001>
module attributes {stable_mosaic.version = 11 : i64} {
  func.func @dnn3_kernel(%arg0: i32, %arg1: memref<8x128xf32, #tpu.memory_space<vmem>>, %arg2: memref<128x128xbf16, #tpu.memory_space<vmem>>, %arg3: memref<128x128xbf16, #tpu.memory_space<vmem>>, %arg4: memref<128x128xbf16, #tpu.memory_space<vmem>>, %arg5: memref<8x128xf32, #tpu.memory_space<vmem>>, %arg6: memref<8x128xf32, #tpu.memory_space<vmem>>) attributes {dimension_semantics = [#tpu.dimension_semantics<parallel>], iteration_bounds = array<i64: 1>, scalar_prefetch = 0 : i64, scratch_operands = 0 : i64, tpu.core_type = #tpu.core_type<tc>, window_params = [{transform_indices = @transform_0, window_bounds = array<i64: 8, 128>}, {pipeline_mode = #tpu.pipeline_mode<synchronous>, transform_indices = @transform_1, window_bounds = array<i64: 128, 128>}, {pipeline_mode = #tpu.pipeline_mode<synchronous>, transform_indices = @transform_2, window_bounds = array<i64: 128, 128>}, {pipeline_mode = #tpu.pipeline_mode<synchronous>, transform_indices = @transform_3, window_bounds = array<i64: 128, 128>}, {pipeline_mode = #tpu.pipeline_mode<synchronous>, transform_indices = @transform_4, window_bounds = array<i64: 8, 128>}, {transform_indices = @transform_5, window_bounds = array<i64: 8, 128>}]} {
    %c0 = arith.constant 0 : index
    %c0_0 = arith.constant 0 : index
    %0 = vector.load %arg5[%c0, %c0_0] : memref<8x128xf32, #tpu.memory_space<vmem>>, vector<1x128xf32>
    %c1 = arith.constant 1 : index
    %c0_1 = arith.constant 0 : index
    %1 = vector.load %arg5[%c1, %c0_1] : memref<8x128xf32, #tpu.memory_space<vmem>>, vector<1x128xf32>
    %c2 = arith.constant 2 : index
    %c0_2 = arith.constant 0 : index
    %2 = vector.load %arg5[%c2, %c0_2] : memref<8x128xf32, #tpu.memory_space<vmem>>, vector<1x128xf32>
    %c0_3 = arith.constant 0 : index
    %c0_4 = arith.constant 0 : index
    %3 = vector.load %arg1[%c0_3, %c0_4] : memref<8x128xf32, #tpu.memory_space<vmem>>, vector<8x128xf32>
    %4 = arith.truncf %3 : vector<8x128xf32> to vector<8x128xbf16>
    %c0_5 = arith.constant 0 : index
    %c0_6 = arith.constant 0 : index
    %5 = vector.load %arg2[%c0_5, %c0_6] : memref<128x128xbf16, #tpu.memory_space<vmem>>, vector<128x128xbf16>
    %cst = arith.constant dense<0.000000e+00> : vector<8x128xf32>
    %6 = tpu.matmul %4, %5, %cst {dimension_numbers = #tpu.dot_dimension_numbers<[1], [0], [0], [1], [0, 0, 1, 1], [], []>} : vector<8x128xbf16>, vector<128x128xbf16>, vector<8x128xf32> -> vector<8x128xf32>
    %7 = vector.broadcast %0 : vector<1x128xf32> to vector<8x128xf32>
    %8 = arith.addf %6, %7 : vector<8x128xf32>
    %cst_7 = arith.constant 0.000000e+00 : f32
    %9 = vector.broadcast %cst_7 : f32 to vector<8x128xf32>
    %10 = arith.maximumf %8, %9 : vector<8x128xf32>
    %11 = arith.truncf %10 : vector<8x128xf32> to vector<8x128xbf16>
    %c0_8 = arith.constant 0 : index
    %c0_9 = arith.constant 0 : index
    %12 = vector.load %arg3[%c0_8, %c0_9] : memref<128x128xbf16, #tpu.memory_space<vmem>>, vector<128x128xbf16>
    %cst_10 = arith.constant dense<0.000000e+00> : vector<8x128xf32>
    %13 = tpu.matmul %11, %12, %cst_10 {dimension_numbers = #tpu.dot_dimension_numbers<[1], [0], [0], [1], [0, 0, 1, 1], [], []>} : vector<8x128xbf16>, vector<128x128xbf16>, vector<8x128xf32> -> vector<8x128xf32>
    %14 = vector.broadcast %1 : vector<1x128xf32> to vector<8x128xf32>
    %15 = arith.addf %13, %14 : vector<8x128xf32>
    %cst_11 = arith.constant 0.000000e+00 : f32
    %16 = vector.broadcast %cst_11 : f32 to vector<8x128xf32>
    %17 = arith.maximumf %15, %16 : vector<8x128xf32>
    %18 = arith.truncf %17 : vector<8x128xf32> to vector<8x128xbf16>
    %c0_12 = arith.constant 0 : index
    %c0_13 = arith.constant 0 : index
    %19 = vector.load %arg4[%c0_12, %c0_13] : memref<128x128xbf16, #tpu.memory_space<vmem>>, vector<128x128xbf16>
    %cst_14 = arith.constant dense<0.000000e+00> : vector<8x128xf32>
    %20 = tpu.matmul %18, %19, %cst_14 {dimension_numbers = #tpu.dot_dimension_numbers<[1], [0], [0], [1], [0, 0, 1, 1], [], []>} : vector<8x128xbf16>, vector<128x128xbf16>, vector<8x128xf32> -> vector<8x128xf32>
    %21 = vector.broadcast %2 : vector<1x128xf32> to vector<8x128xf32>
    %22 = arith.addf %20, %21 : vector<8x128xf32>
    %c0_15 = arith.constant 0 : index
    %c0_16 = arith.constant 0 : index
    %23 = vector.load %arg6[%c0_15, %c0_16] : memref<8x128xf32, #tpu.memory_space<vmem>>, vector<8x128xf32>
    tpu.vector_store %arg6[%c0_15, %c0_16], %22 {strides = array<i32>} : memref<8x128xf32, #tpu.memory_space<vmem>>, vector<8x128xf32>,
    return
  }
  func.func @transform_0(%arg0: i32) -> (i32, i32) {
    %c0_i32 = arith.constant 0 : i32
    %c0_i32_0 = arith.constant 0 : i32
    return %arg0, %c0_i32 : i32, i32
  }
  func.func @transform_1(%arg0: i32) -> (i32, i32) {
    %c0_i32 = arith.constant 0 : i32
    %c0_i32_0 = arith.constant 0 : i32
    %c0_i32_1 = arith.constant 0 : i32
    return %c0_i32, %c0_i32_0 : i32, i32
  }
  func.func @transform_2(%arg0: i32) -> (i32, i32) {
    %c0_i32 = arith.constant 0 : i32
    %c0_i32_0 = arith.constant 0 : i32
    %c0_i32_1 = arith.constant 0 : i32
    return %c0_i32, %c0_i32_0 : i32, i32
  }
  func.func @transform_3(%arg0: i32) -> (i32, i32) {
    %c0_i32 = arith.constant 0 : i32
    %c0_i32_0 = arith.constant 0 : i32
    %c0_i32_1 = arith.constant 0 : i32
    return %c0_i32, %c0_i32_0 : i32, i32
  }
  func.func @transform_4(%arg0: i32) -> (i32, i32) {
    %c0_i32 = arith.constant 0 : i32
    %c0_i32_0 = arith.constant 0 : i32
    %c0_i32_1 = arith.constant 0 : i32
    return %c0_i32, %c0_i32_0 : i32, i32
  }
  func.func @transform_5(%arg0: i32) -> (i32, i32) {
    %c0_i32 = arith.constant 0 : i32
    %c0_i32_0 = arith.constant 0 : i32
    return %arg0, %c0_i32 : i32, i32
  }
}

</mosaic_0001>

<bundles_post_ra>
// kernel: tpu_custom_call.1
= control target key start
LH: loop header
LB: loop body
LE: loop exit
PB: predicated region body
PF: predicated region fallthrough
CT: control target
= control target key end

     0   :  { %10 = vsyncpa [#allocation3], 0  ;;  %s876_s0 = inlined_call_operand.hbm [shape: f32[8,128], index: 0, kind: input, shape index: {}]   ;;  %s877_s1 = inlined_call_operand.hbm [shape: bf16[128,128], index: 1, kind: input, shape index: {}]   ;;  %s878_s2 = inlined_call_operand.hbm [shape: bf16[128,128], index: 2, kind: input, shape index: {}]   ;;  %s879_s3 = inlined_call_operand.hbm [shape: bf16[128,128], index: 3, kind: input, shape index: {}]   ;;  %s880_s4 = inlined_call_operand.hbm [shape: f32[8,128], index: 4, kind: input, shape index: {}]   ;;  %s881_s5 = inlined_call_operand.hbm [shape: f32[8,128], index: 5, kind: output, shape index: {}]  }
   0x1   :  { %11 = vsyncpa [#allocation6], 0 }
   0x2   :  { %12 = vsyncpa [#allocation9], 0 }
   0x3   :  { %13 = vsyncpa [#allocation4], 0  ;;  %s725_s18 = smov [#allocation5]   ;;  %s585_s22 = scalar_lea.hbm %s877_s1, 1024 }
   0x4   :  { %s29_s19 = sshll.u32 %s725_s18, 4  ;;  %p586_p0 = scmp.ne.s32.totalorder %s877_s1, %s585_s22  ;;  %s30_s19 = int_to_ptr.vmem [resolvable:$true] %s29_s19 }
   0x5   :  { %p589_p1 = scmp.lt.u32.totalorder %s585_s22, %s877_s1 }
   0x7   :  { %p591_p2 = pnand %p589_p1, %p586_p0 }
   0x9   :  { %594 = shalt.err (!%p591_p2)
}
   0xa   :  { %s595_s27 = scalar_lea.vmem %s30_s19, 1024  ;;  %p600_p4 = scmp.lt.s32.totalorder %s30_s19, %s30_s19 }
   0xb   :  { %p596_p3 = scmp.ne.s32.totalorder %s30_s19, %s595_s27  ;;  %p601_p5 = scmp.lt.s32.totalorder %s595_s27, %s595_s27 }
   0xd   :  { %p602_p6 = por %p601_p5, %p600_p4 }
   0xf   :  { %p603_p7 = pnand %p602_p6, %p596_p3 }
  0x11   :  { %606 = shalt.err (!%p603_p7)
}
  0x12   :  { %s726_s28 = smov 64   ;;  %s727_s29 = smov 4  }
  0x13   :  { %35 = dma.hbm_to_vmem [thread:$0]  %s877_s1, 1024, %s30_s19, [#allocation6], %s726_s28, %s726_s28, %s727_s29  }
  0x14   :  { %s728_s7 = smov [#allocation8]   ;;  %s729_s9 = smov [#allocation2]  }
  0x15   :  { %s53_s8 = sshll.u32 %s728_s7, 4  ;;  %s20_s10 = sshll.u32 %s729_s9, 4  ;;  %s54_s8 = int_to_ptr.vmem [resolvable:$true] %s53_s8  ;;  %s21_s10 = int_to_ptr.vmem [resolvable:$true] %s20_s10 }
  0x16   :  { %s607_s13 = scalar_lea.hbm %s879_s3, 1024 }
  0x17   :  { %p608_p8 = scmp.ne.s32.totalorder %s879_s3, %s607_s13  ;;  %p611_p9 = scmp.lt.u32.totalorder %s607_s13, %s879_s3 }
  0x19   :  { %p613_p10 = pnand %p611_p9, %p608_p8 }
  0x1b   :  { %616 = shalt.err (!%p613_p10)
}
  0x1c   :  { %s617_s1 = scalar_lea.vmem %s54_s8, 1024  ;;  %p622_p12 = scmp.lt.s32.totalorder %s54_s8, %s54_s8 }
  0x1d   :  { %p618_p11 = scmp.ne.s32.totalorder %s54_s8, %s617_s1  ;;  %p623_p13 = scmp.lt.s32.totalorder %s617_s1, %s617_s1 }
  0x1f   :  { %p624_p0 = por %p623_p13, %p622_p12 }
  0x21   :  { %p625_p1 = pnand %p624_p0, %p618_p11 }
  0x23   :  { %628 = shalt.err (!%p625_p1)
}
  0x24   :  { %59 = dma.hbm_to_vmem [thread:$0]  %s879_s3, 1024, %s54_s8, [#allocation9], %s726_s28, %s726_s28, %s727_s29  }
  0x25   :  { %s629_s22 = scalar_lea.hbm %s876_s0, 128 }
  0x26   :  { %p630_p2 = scmp.ne.s32.totalorder %s876_s0, %s629_s22  ;;  %p633_p3 = scmp.lt.u32.totalorder %s629_s22, %s876_s0 }
  0x28   :  { %p635_p4 = pnand %p633_p3, %p630_p2 }
  0x2a   :  { %638 = shalt.err (!%p635_p4)
}
  0x2b   :  { %s639_s27 = scalar_lea.vmem %s21_s10, 128  ;;  %p644_p6 = scmp.lt.s32.totalorder %s21_s10, %s21_s10 }
  0x2c   :  { %p640_p5 = scmp.ne.s32.totalorder %s21_s10, %s639_s27  ;;  %p645_p7 = scmp.lt.s32.totalorder %s639_s27, %s639_s27 }
  0x2e   :  { %p646_p8 = por %p645_p7, %p644_p6 }
  0x30   :  { %p647_p9 = pnand %p646_p8, %p640_p5 }
  0x32   :  { %650 = shalt.err (!%p647_p9)
}
  0x33   :  { %23 = dma.hbm_to_vmem [thread:$0]  %s876_s0, 128, %s21_s10, [#allocation3]  }
  0x34   :  { %s730_s6 = smov [#allocation7]   ;;  %s731_s8 = smov [#allocation10]  }
  0x35   :  { %s41_s7 = sshll.u32 %s730_s6, 4  ;;  %s66_s9 = sshll.u32 %s731_s8, 4  ;;  %s42_s7 = int_to_ptr.vmem [resolvable:$true] %s41_s7  ;;  %s67_s9 = int_to_ptr.vmem [resolvable:$true] %s66_s9 }
  0x36   :  { %s651_s13 = scalar_lea.hbm %s878_s2, 1024 }
  0x37   :  { %p652_p10 = scmp.ne.s32.totalorder %s878_s2, %s651_s13  ;;  %p655_p11 = scmp.lt.u32.totalorder %s651_s13, %s878_s2 }
  0x39   :  { %p657_p12 = pnand %p655_p11, %p652_p10 }
  0x3b   :  { %660 = shalt.err (!%p657_p12)
}
  0x3c   :  { %s661_s0 = scalar_lea.vmem %s42_s7, 1024  ;;  %p666_p0 = scmp.lt.s32.totalorder %s42_s7, %s42_s7 }
  0x3d   :  { %p662_p13 = scmp.ne.s32.totalorder %s42_s7, %s661_s0  ;;  %p667_p1 = scmp.lt.s32.totalorder %s661_s0, %s661_s0 }
  0x3f   :  { %p668_p2 = por %p667_p1, %p666_p0 }
  0x41   :  { %p669_p3 = pnand %p668_p2, %p662_p13 }
  0x43   :  { %672 = shalt.err (!%p669_p3)
}
  0x44   :  { %47 = dma.hbm_to_vmem [thread:$0]  %s878_s2, 1024, %s42_s7, [#allocation6], %s726_s28, %s726_s28, %s727_s29  }
  0x45   :  { %s673_s20 = scalar_lea.hbm %s880_s4, 128 }
  0x46   :  { %p674_p4 = scmp.ne.s32.totalorder %s880_s4, %s673_s20  ;;  %p677_p5 = scmp.lt.u32.totalorder %s673_s20, %s880_s4 }
  0x48   :  { %p679_p6 = pnand %p677_p5, %p674_p4 }
  0x4a   :  { %682 = shalt.err (!%p679_p6)
}
  0x4b   :  { %s683_s25 = scalar_lea.vmem %s67_s9, 128  ;;  %p688_p8 = scmp.lt.s32.totalorder %s67_s9, %s67_s9 }
  0x4c   :  { %p684_p7 = scmp.ne.s32.totalorder %s67_s9, %s683_s25  ;;  %p689_p9 = scmp.lt.s32.totalorder %s683_s25, %s683_s25 }
  0x4e   :  { %p690_p10 = por %p689_p9, %p688_p8 }
  0x50   :  { %p691_p11 = pnand %p690_p10, %p684_p7 }
  0x52   :  { %694 = shalt.err (!%p691_p11)
}
  0x53   :  { %69 = dma.hbm_to_vmem [thread:$0]  %s880_s4, 128, %s67_s9, [#allocation9]  }
  0x54   :  { %717 = dma.done.wait [#allocation3], 128  }
  0x55   :  { %718 = vsyncadd [#allocation3], 4294967168 }
  0x56   :  { %719 = dma.done.wait [#allocation6], 2048  }
  0x57   :  { %720 = vsyncadd [#allocation6], 4294965248 }
  0x58   :  { %721 = dma.done.wait [#allocation9], 1152  }
  0x59   :  { %722 = vsyncadd [#allocation9], 4294966144  ;;  %v732_v0 = vmov 0.0   ;;  %vm733_vm0 = vmmov 0   ;;  %v561_v1 = vld [vmem:[#allocation5] sm:$0xff]   ;;  %v562_v2 = vld [vmem:[#allocation5 + $0x8] sm:$0xff]  }
  0x5a   :  { %491 = vmatprep.subr.bf16.mxu0 %v732_v0  ;;  %507 = vmatprep.mubr.msk.bf16.mxu0 %vm733_vm0, %v732_v0  ;;  %v563_v3 = vld [vmem:[#allocation5 + $0x10] sm:$0xff]   ;;  %v569_v4 = vld [vmem:[#allocation7] sm:$0xff]   ;;  %v564_v5 = vld [vmem:[#allocation5 + $0x18] sm:$0xff]   ;;  %s734_s4 = smov [#allocation11]  }
  0x5b   :  { %511 = vmatprep.subr.bf16.mxu1 %v732_v0  ;;  %527 = vmatprep.mubr.msk.bf16.mxu1 %vm733_vm0, %v732_v0  ;;  %v570_v6 = vld [vmem:[#allocation7 + $0x8] sm:$0xff]   ;;  %v565_v7 = vld [vmem:[#allocation5 + $0x20] sm:$0xff]   ;;  %v571_v8 = vld [vmem:[#allocation7 + $0x10] sm:$0xff]   ;;  %s426_s29 = sshll.u32 %s734_s4, 4  ;;  %s427_s29 = int_to_ptr.vmem [resolvable:$true] %s426_s29 }
  0x5c   :  { %492 = vmatpush3.bf16.msra.mxu0 %v561_v1  ;;  %512 = vmatpush3.bf16.msra.mxu1 %v569_v4  ;;  %v566_v9 = vld [vmem:[#allocation5 + $0x28] sm:$0xff]   ;;  %v572_v10 = vld [vmem:[#allocation7 + $0x18] sm:$0xff]   ;;  %v567_v11 = vld [vmem:[#allocation5 + $0x30] sm:$0xff]   ;;  %s695_s26 = scalar_lea.vmem %s427_s29, 128  ;;  %p700_p13 = scmp.lt.s32.totalorder %s427_s29, %s427_s29 }
  0x5d   :  { %493 = vmatprep.subr.bf16.mxu0 %v732_v0  ;;  %513 = vmatprep.subr.bf16.mxu1 %v732_v0  ;;  %v573_v12 = vld [vmem:[#allocation7 + $0x20] sm:$0xff]   ;;  %v568_v13 = vld [vmem:[#allocation5 + $0x38] sm:$0xff]   ;;  %v574_v15 = vld [vmem:[#allocation7 + $0x28] sm:$0xff]   ;;  %p696_p12 = scmp.ne.s32.totalorder %s427_s29, %s695_s26  ;;  %p701_p0 = scmp.lt.s32.totalorder %s695_s26, %s695_s26 }
  0x5e   :  { %v89_v14 = vld [vmem:[#allocation2] sm:$0xff]  ;;  %v575_v17 = vld [vmem:[#allocation7 + $0x30] sm:$0xff]   ;;  %v577_v19 = vld [vmem:[#allocation8] sm:$0xff]  }
  0x5f   :  { %v90_v16 = vpack.c.bf16 %v89_v14, %v89_v14  ;;  %v576_v18 = vld [vmem:[#allocation7 + $0x38] sm:$0xff]   ;;  %v578_v20 = vld [vmem:[#allocation8 + $0x8] sm:$0xff]   ;;  %v579_v21 = vld [vmem:[#allocation8 + $0x10] sm:$0xff]   ;;  %p702_p1 = por %p701_p0, %p700_p13 }
  0x60   :  { %494 = vmatpush3.bf16.msra.mxu0 %v562_v2  ;;  %514 = vmatpush3.bf16.msra.mxu1 %v570_v6  ;;  %v580_v22 = vld [vmem:[#allocation8 + $0x18] sm:$0xff]   ;;  %v581_v23 = vld [vmem:[#allocation8 + $0x20] sm:$0xff]   ;;  %v582_v24 = vld [vmem:[#allocation8 + $0x28] sm:$0xff]  }
  0x61   :  { %495 = vmatprep.subr.bf16.mxu0 %v732_v0  ;;  %515 = vmatprep.subr.bf16.mxu1 %v732_v0  ;;  %v437_v25 = vld [vmem:[#allocation10] ss:$0 sm:$0xff]  ;;  %v583_v33 = vld [vmem:[#allocation8 + $0x30] sm:$0xff]   ;;  %v584_v34 = vld [vmem:[#allocation8 + $0x38] sm:$0xff]   ;;  %p703_p2 = pnand %p702_p1, %p696_p12 }
  0x62   :  { %v446_v35 = vld [vmem:[#allocation10 + $0x1] ss:$0 sm:$0xff]  ;;  %v455_v43 = vld [vmem:[#allocation10 + $0x2] ss:$0 sm:$0xff] }
  0x64   :  { %496 = vmatpush3.bf16.msra.mxu0 %v563_v3  ;;  %516 = vmatpush3.bf16.msra.mxu1 %v571_v8 }
  0x65   :  { %497 = vmatprep.subr.bf16.mxu0 %v732_v0  ;;  %517 = vmatprep.subr.bf16.mxu1 %v732_v0 }
  0x68   :  { %498 = vmatpush3.bf16.msra.mxu0 %v564_v5  ;;  %518 = vmatpush3.bf16.msra.mxu1 %v572_v10 }
  0x69   :  { %499 = vmatprep.subr.bf16.mxu0 %v732_v0  ;;  %519 = vmatprep.subr.bf16.mxu1 %v732_v0 }
  0x6c   :  { %500 = vmatpush3.bf16.msra.mxu0 %v565_v7  ;;  %520 = vmatpush3.bf16.msra.mxu1 %v573_v12 }
  0x6d   :  { %501 = vmatprep.subr.bf16.mxu0 %v732_v0  ;;  %521 = vmatprep.subr.bf16.mxu1 %v732_v0 }
  0x70   :  { %502 = vmatpush3.bf16.msra.mxu0 %v566_v9  ;;  %522 = vmatpush3.bf16.msra.mxu1 %v574_v15 }
  0x71   :  { %503 = vmatprep.subr.bf16.mxu0 %v732_v0  ;;  %523 = vmatprep.subr.bf16.mxu1 %v732_v0 }
  0x74   :  { %504 = vmatpush3.bf16.msra.mxu0 %v567_v11  ;;  %524 = vmatpush3.bf16.msra.mxu1 %v575_v17 }
  0x75   :  { %505 = vmatprep.subr.bf16.mxu0 %v732_v0  ;;  %525 = vmatprep.subr.bf16.mxu1 %v732_v0 }
  0x78   :  { %506 = vmatpush3.bf16.msra.mxu0 %v568_v13  ;;  %526 = vmatpush3.bf16.msra.mxu1 %v576_v18 }
  0x79   :  { %531 = vmatprep.subr.bf16.mxu0 %v732_v0 }
  0x7b   :  { %508 = vmatmul.mubr.bf16.vlgmr.msra.gmra.mrb[0].mxu0 %v90_v16 }
  0x7c   :  { %547 = vmatprep.mubr.msk.bf16.mxu0 %vm733_vm0, %v732_v0  ;;  %532 = vmatpush3.bf16.msra.mxu0 %v577_v19 }
  0x7d   :  { %533 = vmatprep.subr.bf16.mxu0 %v732_v0 }
  0x80   :  { %534 = vmatpush3.bf16.msra.mxu0 %v578_v20 }
  0x81   :  { %535 = vmatprep.subr.bf16.mxu0 %v732_v0 }
  0x84   :  { %536 = vmatpush3.bf16.msra.mxu0 %v579_v21 }
  0x85   :  { %537 = vmatprep.subr.bf16.mxu0 %v732_v0 }
  0x88   :  { %538 = vmatpush3.bf16.msra.mxu0 %v580_v22 }
  0x89   :  { %539 = vmatprep.subr.bf16.mxu0 %v732_v0 }
  0x8c   :  { %540 = vmatpush3.bf16.msra.mxu0 %v581_v23 }
  0x8d   :  { %541 = vmatprep.subr.bf16.mxu0 %v732_v0 }
  0x90   :  { %542 = vmatpush3.bf16.msra.mxu0 %v582_v24 }
  0x91   :  { %543 = vmatprep.subr.bf16.mxu0 %v732_v0 }
  0x94   :  { %544 = vmatpush3.bf16.msra.mxu0 %v583_v33 }
  0x95   :  { %545 = vmatprep.subr.bf16.mxu0 %v732_v0 }
  0x98   :  { %546 = vmatpush3.bf16.msra.mxu0 %v584_v34 }
 0x14e   :  { %v193_v26 = vpop.f32.mrb[0].mxu0 }
 0x14f   :  { %v194_v27 = vadd.f32 %v437_v25, %v193_v26  ;;  %v509_v28 = vpop.f32.mrb[1].mxu0 }
 0x150   :  { %v196_v29 = vpop.f32.mrb[2].mxu0 }
 0x151   :  { %v199_v30 = vmax.f32 %v194_v27, 0.0  ;;  %v510_v31 = vpop.f32.mrb[3].mxu0 }
 0x153   :  { %v200_v32 = vpack.c.bf16 %v199_v30, %v199_v30 }
 0x155   :  { %528 = vmatmul.mubr.bf16.vlgmr.msra.gmra.mrb[0].mxu1 %v200_v32 }
 0x228   :  { %v303_v36 = vpop.f32.mrb[0].mxu1 }
 0x229   :  { %v304_v37 = vadd.f32 %v446_v35, %v303_v36  ;;  %v529_v38 = vpop.f32.mrb[1].mxu1 }
 0x22a   :  { %v306_v39 = vpop.f32.mrb[2].mxu1 }
 0x22b   :  { %v309_v40 = vmax.f32 %v304_v37, 0.0  ;;  %v530_v41 = vpop.f32.mrb[3].mxu1 }
 0x22d   :  { %v310_v42 = vpack.c.bf16 %v309_v40, %v309_v40 }
 0x22f   :  { %548 = vmatmul.mubr.bf16.vlgmr.msra.gmra.mrb[4].mxu0 %v310_v42 }
 0x302   :  { %v413_v44 = vpop.f32.mrb[4].mxu0 }
 0x303   :  { %v414_v45 = vadd.f32 %v455_v43, %v413_v44  ;;  %v549_v46 = vpop.f32.mrb[5].mxu0 }
 0x304   :  { %v416_v47 = vpop.f32.mrb[6].mxu0 }
 0x305   :  { %419 = vst [vmem:[#allocation11] sm:$0xff] %v414_v45  ;;  %v550_v48 = vpop.f32.mrb[7].mxu0 }
 0x306   :  { %706 = shalt.err (!%p703_p2)
}
 0x307   :  { %s707_s30 = scalar_lea.hbm %s881_s5, 128 }
 0x308   :  { %p708_p3 = scmp.ne.s32.totalorder %s881_s5, %s707_s30  ;;  %p711_p4 = scmp.lt.u32.totalorder %s707_s30, %s881_s5 }
 0x30a   :  { %p713_p5 = pnand %p711_p4, %p708_p3 }
 0x30c   :  { %716 = shalt.err (!%p713_p5)
}
 0x30d   :  { %429 = dma.vmem_to_hbm [thread:$0]  %s427_s29, 128, %s881_s5, [#allocation4]  }
 0x30e   :  { %723 = dma.done.wait [#allocation4], 128  }
 0x30f   :  { %724 = vsyncadd [#allocation4], 4294967168 }
 0x310   :  { %433 = vsyncpa [#allocation3], 1 }
 0x311   :  { %434 = vsyncpa [#allocation6], 1 }
 0x312   :  { %435 = vsyncpa [#allocation9], 1 }
 0x313   :  { %436 = vsyncpa [#allocation4], 1 }

</bundles_post_ra>
